<compile_context>
chip_gen: v6e
topology: v6e:2x2x1
jax: 0.10.0
libtpu: 0.0.40
codegen_flags: <defaults>
</compile_context>

<pallas_src>
import functools

import jax
import jax.numpy as jnp
from jax import lax
from jax.experimental import pallas as pl
from jax.experimental.pallas import tpu as pltpu


def _round_up(x, m):
    return (x + m - 1) // m * m


def _critic_kernel(x_ref, w1_ref, b1_ref, w2_ref, b2_ref, o_ref, *, mxu_dtype):
    # x_ref : (B_TILE, D_in)  batch tile
    # w1_ref: (H, D_in)       PyTorch Linear layout (out_features, in_features)
    # b1_ref: (H, 1)
    # w2_ref: (H, 1)          value_layer.weight transposed to a column
    # b2_ref: (1,)            scalar bias in SMEM
    # o_ref : (1, B_TILE)     lane-dense value row for this batch tile
    x = x_ref[...]
    w1 = w1_ref[...]
    if mxu_dtype is not None:
        x = x.astype(mxu_dtype)
        w1 = w1.astype(mxu_dtype)
    # h^T = W1 @ x^T : (H, B_TILE).  Batch is the MXU N dimension.
    h = lax.dot_general(w1, x, (((1,), (1,)), ((), ())),
                        preferred_element_type=jnp.float32)
    h = jnp.maximum(h + b1_ref[...], 0.0)                       # bias + relu in f32 (VPU)
    # Second Linear (output width 1): VPU multiply + sublane reduce, no second MXU pass.
    v = jnp.sum(h * w2_ref[...], axis=0, keepdims=True) + b2_ref[0]   # (1, B_TILE)
    o_ref[...] = v.astype(o_ref.dtype)


def critic_forward(x, w1, b1, w2, b2, *, block_b=1024, mxu_dtype=None):
    """value = relu(x @ w1.T + b1) @ w2.T + b2, with PyTorch parameter layouts.

    x: (B, D_in); w1: (H, D_in); b1: (H,); w2: (1, H); b2: (1,) or scalar.
    Returns (B, 1).
    """
    B, d_in = x.shape
    H = w1.shape[0]

    # Batch tile: multiple of 8 (sublane), capped at block_b.  Per-step VMEM is about
    # (2*bt*d_in + H*bt + 2*bt) * 4 bytes -- far below the 32 MiB scoped budget even on
    # v7x for these shapes; raise block_b for larger d_in/H as the budget allows.
    bt = min(block_b, _round_up(B, 8))
    bt = _round_up(bt, 8)
    b_pad = _round_up(B, bt)
    n_tiles = b_pad // bt
    if b_pad != B:
        x = jnp.pad(x, ((0, b_pad - B), (0, 0)))

    b1_col = jnp.reshape(b1, (H, 1)).astype(jnp.float32)
    w2_col = jnp.reshape(w2, (H, 1)).astype(jnp.float32)
    b2_s = jnp.reshape(b2, (1,)).astype(jnp.float32)

    kernel = functools.partial(_critic_kernel, mxu_dtype=mxu_dtype)

    itemsize = jnp.dtype(x.dtype).itemsize
    cost = pl.CostEstimate(
        flops=2 * b_pad * d_in * H + 4 * b_pad * H,
        transcendentals=0,
        bytes_accessed=(b_pad * d_in * itemsize          # x
                        + H * d_in * 4 + H * 4 * 2 + 4   # w1, b1, w2, b2
                        + b_pad * itemsize),             # out
    )

    out = pl.pallas_call(
        kernel,
        out_shape=jax.ShapeDtypeStruct((n_tiles, bt), x.dtype),
        grid_spec=pltpu.PrefetchScalarGridSpec(
            num_scalar_prefetch=0,
            grid=(n_tiles,),
            in_specs=[
                pl.BlockSpec((bt, d_in), lambda i: (i, 0)),           # batch tile
                pl.BlockSpec((H, d_in), lambda i: (0, 0)),            # resident W1
                pl.BlockSpec((H, 1), lambda i: (0, 0)),               # resident b1
                pl.BlockSpec((H, 1), lambda i: (0, 0)),               # resident W2
                pl.BlockSpec(memory_space=pltpu.MemorySpace.SMEM),    # b2 scalar
            ],
            out_specs=pl.BlockSpec((1, bt), lambda i: (i, 0)),        # lane-dense row
        ),
        compiler_params=pltpu.CompilerParams(
            dimension_semantics=("parallel",),
        ),
        cost_estimate=cost,
    )(x, w1, b1_col, w2_col, b2_s)

    # (n_tiles, bt) lane-dense rows -> (B, 1) column; pure layout plumbing in the wrapper.
    return out.reshape(-1)[:B].reshape(B, 1)


if __name__ == "__main__":
    batch, input_dim, hidden_dim = 8, 16, 32

    key = jax.random.PRNGKey(0)
    kx, k1, k2, k3, k4 = jax.random.split(key, 5)

    x = jax.random.normal(kx, (batch, input_dim), dtype=jnp.float32)

    # PyTorch-Linear-style params: weight (out_features, in_features), bias (out_features,)
    bound1 = 1.0 / (input_dim ** 0.5)
    w1 = jax.random.uniform(k1, (hidden_dim, input_dim), jnp.float32, -bound1, bound1)
    b1 = jax.random.uniform(k2, (hidden_dim,), jnp.float32, -bound1, bound1)
    bound2 = 1.0 / (hidden_dim ** 0.5)
    w2 = jax.random.uniform(k3, (1, hidden_dim), jnp.float32, -bound2, bound2)
    b2 = jax.random.uniform(k4, (1,), jnp.float32, -bound2, bound2)

    hp = lax.Precision.HIGHEST
    ref = (jnp.dot(jnp.maximum(jnp.dot(x, w1.T, precision=hp) + b1, 0.0),
                   w2.T, precision=hp) + b2)

    # f32 path, single batch tile.
    out = jax.block_until_ready(critic_forward(x, w1, b1, w2, b2))
    assert out.shape == (batch, 1)
    assert jnp.allclose(out, ref, atol=1e-5, rtol=1e-5)

    # Batch-tiled path (grid > 1, padded batch) at a larger batch size.
    big_b = 200
    xb = jax.random.normal(kx, (big_b, input_dim), dtype=jnp.float32)
    refb = (jnp.dot(jnp.maximum(jnp.dot(xb, w1.T, precision=hp) + b1, 0.0),
                    w2.T, precision=hp) + b2)
    outb = jax.block_until_ready(critic_forward(xb, w1, b1, w2, b2, block_b=128))
    assert outb.shape == (big_b, 1)
    assert jnp.allclose(outb, refb, atol=1e-5, rtol=1e-5)

    # bf16 MXU inputs (v6e/v7x option); epilogue stays f32, loose tolerance.
    outbf = jax.block_until_ready(
        critic_forward(xb, w1, b1, w2, b2, block_b=128, mxu_dtype=jnp.bfloat16))
    assert jnp.allclose(outbf, refb, atol=5e-2, rtol=5e-2)

    print("KERNEL_OK")
</pallas_src>

<mosaic_0001>
module attributes {stable_mosaic.version = 11 : i64} {
  func.func @_critic_kernel(%arg0: i32, %arg1: memref<8x16xf32, #tpu.memory_space<vmem>>, %arg2: memref<32x16xf32, #tpu.memory_space<vmem>>, %arg3: memref<32x1xf32, #tpu.memory_space<vmem>>, %arg4: memref<32x1xf32, #tpu.memory_space<vmem>>, %arg5: memref<1xf32, #tpu.memory_space<smem>>, %arg6: memref<1x8xf32, #tpu.memory_space<vmem>>) attributes {dimension_semantics = [#tpu.dimension_semantics<parallel>], iteration_bounds = array<i64: 1>, scalar_prefetch = 0 : i64, scratch_operands = 0 : i64, tpu.core_type = #tpu.core_type<tc>, window_params = [{transform_indices = @transform_0, window_bounds = array<i64: 8, 16>}, {pipeline_mode = #tpu.pipeline_mode<synchronous>, transform_indices = @transform_1, window_bounds = array<i64: 32, 16>}, {pipeline_mode = #tpu.pipeline_mode<synchronous>, transform_indices = @transform_2, window_bounds = array<i64: 32, 1>}, {pipeline_mode = #tpu.pipeline_mode<synchronous>, transform_indices = @transform_3, window_bounds = array<i64: 32, 1>}, {transform_indices = @transform_4, window_bounds = array<i64: 1>}, {transform_indices = @transform_5, window_bounds = array<i64: 1, 8>}]} {
    %c0 = arith.constant 0 : index
    %c0_0 = arith.constant 0 : index
    %0 = vector.load %arg1[%c0, %c0_0] : memref<8x16xf32, #tpu.memory_space<vmem>>, vector<8x16xf32>
    %c0_1 = arith.constant 0 : index
    %c0_2 = arith.constant 0 : index
    %1 = vector.load %arg2[%c0_1, %c0_2] : memref<32x16xf32, #tpu.memory_space<vmem>>, vector<32x16xf32>
    %cst = arith.constant dense<0.000000e+00> : vector<32x8xf32>
    %2 = tpu.matmul %1, %0, %cst {dimension_numbers = #tpu.dot_dimension_numbers<[1], [1], [0], [0], [0, 0, 1, 0], [], []>} : vector<32x16xf32>, vector<8x16xf32>, vector<32x8xf32> -> vector<32x8xf32>
    %c0_3 = arith.constant 0 : index
    %c0_4 = arith.constant 0 : index
    %3 = vector.load %arg3[%c0_3, %c0_4] : memref<32x1xf32, #tpu.memory_space<vmem>>, vector<32x1xf32>
    %4 = vector.broadcast %3 : vector<32x1xf32> to vector<32x8xf32>
    %5 = arith.addf %2, %4 : vector<32x8xf32>
    %cst_5 = arith.constant 0.000000e+00 : f32
    %6 = vector.broadcast %cst_5 : f32 to vector<32x8xf32>
    %7 = arith.maximumf %5, %6 : vector<32x8xf32>
    %c0_6 = arith.constant 0 : index
    %c0_7 = arith.constant 0 : index
    %8 = vector.load %arg4[%c0_6, %c0_7] : memref<32x1xf32, #tpu.memory_space<vmem>>, vector<32x1xf32>
    %9 = vector.broadcast %8 : vector<32x1xf32> to vector<32x8xf32>
    %10 = arith.mulf %7, %9 : vector<32x8xf32>
    %cst_8 = arith.constant dense<0.000000e+00> : vector<8xf32>
    %11 = vector.multi_reduction <add>, %10, %cst_8 [0] : vector<32x8xf32> to vector<8xf32>
    %12 = vector.shape_cast %11 : vector<8xf32> to vector<1x8xf32>
    %c0_9 = arith.constant 0 : index
    %13 = memref.load %arg5[%c0_9] : memref<1xf32, #tpu.memory_space<smem>>
    %14 = vector.broadcast %13 : f32 to vector<1x8xf32>
    %15 = arith.addf %12, %14 : vector<1x8xf32>
    %c0_10 = arith.constant 0 : index
    %c0_11 = arith.constant 0 : index
    %16 = vector.load %arg6[%c0_10, %c0_11] : memref<1x8xf32, #tpu.memory_space<vmem>>, vector<1x8xf32>
    tpu.vector_store %arg6[%c0_10, %c0_11], %15 {strides = array<i32>} : memref<1x8xf32, #tpu.memory_space<vmem>>, vector<1x8xf32>,
    return
  }
  func.func @transform_0(%arg0: i32) -> (i32, i32) {
    %c0_i32 = arith.constant 0 : i32
    %c0_i32_0 = arith.constant 0 : i32
    return %arg0, %c0_i32 : i32, i32
  }
  func.func @transform_1(%arg0: i32) -> (i32, i32) {
    %c0_i32 = arith.constant 0 : i32
    %c0_i32_0 = arith.constant 0 : i32
    %c0_i32_1 = arith.constant 0 : i32
    return %c0_i32, %c0_i32_0 : i32, i32
  }
  func.func @transform_2(%arg0: i32) -> (i32, i32) {
    %c0_i32 = arith.constant 0 : i32
    %c0_i32_0 = arith.constant 0 : i32
    %c0_i32_1 = arith.constant 0 : i32
    return %c0_i32, %c0_i32_0 : i32, i32
  }
  func.func @transform_3(%arg0: i32) -> (i32, i32) {
    %c0_i32 = arith.constant 0 : i32
    %c0_i32_0 = arith.constant 0 : i32
    %c0_i32_1 = arith.constant 0 : i32
    return %c0_i32, %c0_i32_0 : i32, i32
  }
  func.func @transform_4(%arg0: i32) -> i32 {
    %c0_i32 = arith.constant 0 : i32
    %c0_i32_0 = arith.constant 0 : i32
    return %c0_i32 : i32
  }
  func.func @transform_5(%arg0: i32) -> (i32, i32) {
    %c0_i32 = arith.constant 0 : i32
    %c0_i32_0 = arith.constant 0 : i32
    return %arg0, %c0_i32 : i32, i32
  }
}

</mosaic_0001>

<bundles_post_ra>
// kernel: tpu_custom_call.1
= control target key start
LH: loop header
LB: loop body
LE: loop exit
PB: predicated region body
PF: predicated region fallthrough
CT: control target
= control target key end

     0   :  { %vm51_vm0 = vcmask 130048   ;;  %v263_v7 = vmov 0   ;;  %s348_s0 = inlined_call_operand.vmem [shape: f32[8,16], index: 0, kind: input, shape index: {}]   ;;  %s349_s1 = inlined_call_operand.vmem [shape: f32[32,16], index: 1, kind: input, shape index: {}]   ;;  %s350_s2 = inlined_call_operand.vmem [shape: f32[32,1], index: 2, kind: input, shape index: {}]   ;;  %s351_s3 = inlined_call_operand.vmem [shape: f32[32,1], index: 3, kind: input, shape index: {}]   ;;  %s352_s4 = inlined_call_operand.<no memory space> [shape: f32[1], index: 4, kind: input, shape index: {}]   ;;  %s353_s5 = inlined_call_operand.hbm [shape: f32[1,8], index: 5, kind: output, shape index: {}]  }
   0x1   :  { %v22_v0 = vld [vmem:[%s348_s0] sm:$0xff]  ;;  %v25_v2 = vld [vmem:[%s349_s1 + $0x10] sm:$0xff]  ;;  %v24_v3 = vld [vmem:[%s349_s1 + $0x8] sm:$0xff]  ;;  %239 = vset.pattern.permute.xlu0 %v263_v7  ;;  %240 = vset.pattern.permute.xlu1 %v263_v7 }
   0x2   :  { %v23_v1 = vld [vmem:[%s349_s1] sm:$0xff]  ;;  %227 = vmatprep.subr.msk.mxu0 %vm51_vm0, %v22_v0  ;;  %235 = vmatprep.subr.msk.mxu1 %vm51_vm0, %v22_v0  ;;  %v26_v4 = vld [vmem:[%s349_s1 + $0x18] sm:$0xff]  ;;  %v29_v6 = vld [vmem:[%s350_s2 + $0x10] sm:$0xff] }
   0x3   :  { %228 = vmatpush3.xpose.msk.msra.mxu0 %vm51_vm0, %v22_v0  ;;  %236 = vmatpush3.xpose.msk.msra.mxu1 %vm51_vm0, %v22_v0  ;;  %v27_v5 = vld [vmem:[%s350_s2] sm:$0xff] }
   0x4   :  { %229 = vmatprep.mubr.msk.f32.mxu0 %vm51_vm0, %v23_v1  ;;  %232 = vmatprep.mubr.msk.f32.mxu1 %vm51_vm0, %v25_v2 }
   0x5   :  { %11 = vsyncpa [#allocation4], 0  ;;  %33 = vperm.xlu0 %239, %v27_v5   ;;  %43 = vperm.xlu1 %240, %v29_v6   ;;  %v28_v8 = vld [vmem:[%s350_s2 + $0x8] sm:$0xff]  ;;  %v30_v9 = vld [vmem:[%s350_s2 + $0x18] sm:$0xff]  ;;  %vm184_vm1 = vcmask 64512   ;;  %v199_v50 = vstv %s352_s4  ;;  %s264_s17 = smov [#allocation3]  }
   0x6   :  { %230 = vmatmul.mubr.msk.f32.vlgmr.msra.gmra.mxu0 %vm51_vm0, %v24_v3  ;;  %233 = vmatmul.mubr.msk.f32.vlgmr.msra.gmra.mxu1 %vm51_vm0, %v26_v4  ;;  %v156_v10 = vld [vmem:[%s351_s3] sm:$0xff]  ;;  %v157_v11 = vld [vmem:[%s351_s3 + $0x8] sm:$0xff]  ;;  %v158_v12 = vld [vmem:[%s351_s3 + $0x10] sm:$0xff]  ;;  %s209_s18 = sshll.u32 %s264_s17, 4  ;;  %vm201_vm2 = vcmask 57344   ;;  %s210_s18 = int_to_ptr.vmem [resolvable:$true] %s209_s18 }
   0x7   :  { %v159_v13 = vld [vmem:[%s351_s3 + $0x18] sm:$0xff]  ;;  %s241_s19 = scalar_lea.vmem %s210_s18, 16  ;;  %s245_s20 = scalar_lea.vmem %s210_s18, 32 }
   0x8   :  { %p242_p0 = scmp.ne.s32.totalorder %s210_s18, %s241_s19  ;;  %p246_p1 = scmp.lt.s32.totalorder %s210_s18, %s210_s18 }
   0x9   :  { %38 = vperm.xlu0 %239, %v28_v8   ;;  %48 = vperm.xlu1 %240, %v30_v9   ;;  %p247_p2 = scmp.lt.s32.totalorder %s245_s20, %s241_s19 }
   0xb   :  { %p248_p3 = por %p247_p2, %p246_p1 }
   0xd   :  { %162 = vperm.xlu0 %239, %v156_v10   ;;  %167 = vperm.xlu1 %240, %v157_v11   ;;  %p249_p4 = pnand %p248_p3, %p242_p0 }
  0x11   :  { %172 = vperm.xlu0 %239, %v158_v12   ;;  %177 = vperm.xlu1 %240, %v159_v13  }
  0x80   :  { %v34_v14 = vpop.permute.xlu0 %33  ;;  %v44_v15 = vpop.permute.xlu1 %43 }
  0x84   :  { %v39_v16 = vpop.permute.xlu0 %38  ;;  %v49_v17 = vpop.permute.xlu1 %48 }
  0x88   :  { %v163_v18 = vpop.permute.xlu0 %162  ;;  %v168_v21 = vpop.permute.xlu1 %167 }
  0x8c   :  { %v173_v33 = vpop.permute.xlu0 %172  ;;  %v178_v36 = vpop.permute.xlu1 %177 }
  0xc6   :  { %v231_v19 = vpop.f32.mrf.mxu0  ;;  %v234_v20 = vpop.f32.mrf.mxu1 }
  0xc7   :  { %v139_v22 = vadd.f32 %v231_v19, %v39_v16  ;;  %v149_v23 = vadd.f32 %v234_v20, %v49_v17 }
  0xc8   :  { %v133_v24 = vpop.f32.mrf.mxu0  ;;  %v143_v25 = vpop.f32.mrf.mxu1 }
  0xc9   :  { %v153_v26 = vmax.f32 %v139_v22, 0.0  ;;  %v134_v27 = vadd.f32 %v133_v24, %v34_v14  ;;  %v144_v28 = vadd.f32 %v143_v25, %v44_v15  ;;  %v155_v30 = vmax.f32 %v149_v23, 0.0 }
  0xcb   :  { %v181_v29 = vmul.f32 %v168_v21, %v153_v26  ;;  %v152_v31 = vmax.f32 %v134_v27, 0.0  ;;  %v154_v32 = vmax.f32 %v144_v28, 0.0  ;;  %v183_v38 = vmul.f32 %v178_v36, %v155_v30 }
  0xcd   :  { %v180_v34 = vmul.f32 %v163_v18, %v152_v31  ;;  %v182_v35 = vmul.f32 %v173_v33, %v154_v32  ;;  %v186_v37 = vsel %vm184_vm1, %v181_v29, 0.0  ;;  %v190_v43 = vsel %vm184_vm1, %v183_v38, 0.0 }
  0xcf   :  { %v185_v39 = vsel %vm184_vm1, %v180_v34, 0.0  ;;  %v188_v41 = vsel %vm184_vm1, %v182_v35, 0.0 }
  0xd0   :  { %v187_v40 = vadd.f32 %v186_v37, %v185_v39 }
  0xd2   :  { %v189_v42 = vadd.f32 %v188_v41, %v187_v40 }
  0xd4   :  { %v191_v44 = vadd.f32 %v190_v43, %v189_v42 }
  0xd6   :  { %v192_v45 = vrot.slane %v191_v44, 4 }
  0xd8   :  { %v193_v46 = vadd.f32 %v192_v45, %v191_v44 }
  0xda   :  { %v194_v47 = vrot.slane %v193_v46, 2 }
  0xdc   :  { %v195_v48 = vadd.f32 %v194_v47, %v193_v46 }
  0xde   :  { %v196_v49 = vrot.slane %v195_v48, 1 }
  0xe0   :  { %v197_v51 = vadd.f32 %v196_v49, %v195_v48 }
  0xe2   :  { %v200_v52 = vadd.f32 %v199_v50, %v197_v51 }
  0xe4   :  { %202 = vst.msk [vmem:[#allocation3] sm:$0x1] %vm201_vm2, %v200_v52 }
  0xe5   :  { %252 = shalt.err (!%p249_p4)
}
  0xe6   :  { %212 = dma.vmem_to_hbm [thread:$0]  %s210_s18, 16, %s353_s5, [#allocation4]  }
  0xe7   :  { %261 = dma.done.wait [#allocation4], 16  }
  0xe8   :  { %262 = vsyncadd [#allocation4], 4294967280 }
  0xe9   :  { %216 = vsyncpa [#allocation4], 1 }

</bundles_post_ra>
